<compile_context>
chip_gen: v6e
topology: v6e:2x2x1
jax: 0.10.0
libtpu: 0.0.40
codegen_flags: <defaults>
</compile_context>

<pallas_src>
import jax
import jax.numpy as jnp
from jax.experimental import pallas as pl
from jax.experimental.pallas import tpu as pltpu


def _round_up(x, m):
    return ((x + m - 1) // m) * m


def fc_kernel(x_ref, w_ref, b_ref, o_ref):
    # x_ref: [TB, 512] (feature dtype; ideally bf16 straight from the backbone)
    # w_ref: [512, C_pad] bf16        b_ref: [1, C_pad] f32
    # o_ref: [TB, C_pad] (out dtype)
    x = x_ref[...].astype(w_ref.dtype)          # no-op when features are bf16
    acc = jnp.dot(x, w_ref[...], preferred_element_type=jnp.float32)
    o_ref[...] = (acc + b_ref[...]).astype(o_ref.dtype)


def fc_pallas(x, w_packed, b_packed, *, block_b=1024, out_dtype=None):
    """Linear head: x @ W + b with pre-transposed / lane-padded / bf16 W.

    x:        [B, 512]      features (bf16 preferred: kernel is x-DMA bound)
    w_packed: [512, C_pad]  bf16, classes zero-padded to a lane multiple
    b_packed: [1, C_pad]    f32, zero-padded
    returns:  [B, C_pad]    out_dtype (default x.dtype); padded class columns
                            are exactly the zero-padded bias (i.e. zeros).
    """
    B, D = x.shape
    Dw, C_pad = w_packed.shape
    assert Dw == D and C_pad % 128 == 0
    out_dtype = x.dtype if out_dtype is None else out_dtype

    x_it = jnp.dtype(x.dtype).itemsize
    o_it = jnp.dtype(out_dtype).itemsize
    w_it = jnp.dtype(w_packed.dtype).itemsize

    # --- batch tiling: never pad/copy x in the wrapper ----------------------
    # Blocks are a multiple of 8 sublanes (or one full-extent block); a ragged
    # last block is fine: OOB reads only feed OOB output rows, whose writes
    # are dropped, and the reduction (over D) is fully in-bounds.
    block_b = max(8, _round_up(block_b, 8))

    # VMEM budget: stay well under v7x's 64 MiB per-TensorCore physical VMEM
    # (v5e/v6e have 128 MiB, so this is conservative there too).
    budget = 40 * 1024 * 1024
    fixed = 2 * (D * C_pad * w_it + C_pad * 4)       # W + bias (x2 pipeline bufs)
    per_row = 2 * (D * x_it + C_pad * o_it)          # double-buffered x + out rows
    max_tb = max(8, (budget - fixed) // per_row // 8 * 8)
    # TODO(synk): add a class-dimension grid axis if C_pad alone ever outgrows
    #             this budget (only after Incremental_learning to many
    #             thousands of classes; matters first on v7x).
    block_b = min(block_b, max_tb)

    # >= 2 batch tiles once the batch is big enough to split across the two
    # TensorCores of a v7x chip (harmless on v5e/v6e).
    n_tiles = max(pl.cdiv(B, block_b), 2 if B >= 128 else 1)
    if n_tiles == 1:
        tb = B                               # one full-extent tile, no padding
    else:
        tb = min(_round_up(pl.cdiv(B, n_tiles), 8), block_b)
    grid_b = pl.cdiv(B, tb)

    cost = pl.CostEstimate(
        flops=2 * B * D * C_pad,
        transcendentals=0,
        bytes_accessed=(B * D * x_it            # x
                        + D * C_pad * w_it      # W (bf16, fetched once)
                        + C_pad * 4             # bias
                        + B * C_pad * o_it),    # out
    )

    # Tight, generation-aware VMEM request: actual tile footprint + headroom,
    # capped below v7x's 64 MiB physical VMEM.
    vmem_limit = int(min(max(fixed + tb * per_row + (8 << 20), 16 << 20),
                         48 << 20))

    return pl.pallas_call(
        fc_kernel,
        out_shape=jax.ShapeDtypeStruct((B, C_pad), out_dtype),
        grid_spec=pltpu.PrefetchScalarGridSpec(
            num_scalar_prefetch=0,
            grid=(grid_b,),
            in_specs=[
                pl.BlockSpec((tb, D), lambda i: (i, 0)),     # x: batch-tiled
                pl.BlockSpec((D, C_pad), lambda i: (0, 0)),  # W: resident, fetched once
                pl.BlockSpec((1, C_pad), lambda i: (0, 0)),  # b: resident
            ],
            out_specs=pl.BlockSpec((tb, C_pad), lambda i: (i, 0)),
        ),
        compiler_params=pltpu.CompilerParams(
            dimension_semantics=("parallel",),   # shard batch tiles across TCs
            vmem_limit_bytes=vmem_limit,
        ),
        cost_estimate=cost,
    )(x, w_packed, b_packed)


class Network:
    """JAX/Pallas port of the PyTorch `network` module."""

    IN_FEATURES = 512

    def __init__(self, numclass, key, feature_extractor=None):
        self.numclass = numclass
        self.feature_extractor = feature_extractor   # identity if None
        kw, kb, self._key = jax.random.split(key, 3)
        bound = 1.0 / (self.IN_FEATURES ** 0.5)       # nn.Linear default init
        # PyTorch-layout master copies (f32) kept for reference / growth.
        self.fc_weight = jax.random.uniform(
            kw, (numclass, self.IN_FEATURES), jnp.float32,
            minval=-bound, maxval=bound)
        self.fc_bias = jax.random.uniform(
            kb, (numclass,), jnp.float32, minval=-bound, maxval=bound)
        self._repack()

    def _repack(self):
        """Pre-transpose, lane-pad, cast W to bf16 once (not per call)."""
        # 128-lane alignment for unmasked stores; 256 once the head is large
        # enough to approach compute-bound (full 256-wide MXU cols on v6e/v7x).
        align = 256 if self.numclass >= 2048 else 128
        c_pad = _round_up(self.numclass, align)
        w_t = jnp.zeros((self.IN_FEATURES, c_pad), jnp.float32)
        w_t = w_t.at[:, :self.numclass].set(self.fc_weight.T)
        self.w_packed = w_t.astype(jnp.bfloat16)
        self.b_packed = jnp.zeros((1, c_pad), jnp.float32).at[
            :, :self.numclass].set(self.fc_bias)

    def Incremental_learning(self, numclass, key=None):
        # Mirrors the PyTorch module: fresh nn.Linear, old rows copied over.
        if key is None:
            self._key, key = jax.random.split(self._key)
        kw, kb = jax.random.split(key)
        bound = 1.0 / (self.IN_FEATURES ** 0.5)
        w = jax.random.uniform(kw, (numclass, self.IN_FEATURES), jnp.float32,
                               minval=-bound, maxval=bound)
        b = jax.random.uniform(kb, (numclass,), jnp.float32,
                               minval=-bound, maxval=bound)
        old_c = min(self.numclass, numclass)
        self.fc_weight = w.at[:old_c].set(self.fc_weight[:old_c])
        self.fc_bias = b.at[:old_c].set(self.fc_bias[:old_c])
        self.numclass = numclass
        self._repack()

    def feature(self, inputs):
        # Backbone is injected externally in the original module; identity here.
        # For best throughput the backbone should EMIT bf16 features (the FC
        # kernel is x-DMA bound); no standalone f32->bf16 cast is added here
        # because that would be its own HBM pass.
        # TODO(synk): replace with a real feature-extractor kernel when given.
        if self.feature_extractor is not None:
            return self.feature_extractor(inputs)
        return inputs

    def __call__(self, inputs, return_padded=False):
        x = self.feature(inputs)                                  # [B, 512]
        logits = fc_pallas(x, self.w_packed, self.b_packed)       # [B, C_pad]
        if return_padded:
            # Preferred for perf: let the consumer (loss/softmax) slice or
            # mask the zero-padded class columns instead of copying here.
            return logits
        return logits[:, :self.numclass]                          # nn.Linear semantics


if __name__ == "__main__":
    key = jax.random.PRNGKey(0)
    k_in, k_in2, k_net = jax.random.split(key, 3)

    D, NUMCLASS = 512, 10
    net = Network(NUMCLASS, k_net)

    # --- path 1: bf16 features (as a real backbone would emit), small batch ---
    B = 8
    feats_f32 = jax.random.normal(k_in, (B, D), jnp.float32)
    feats = feats_f32.astype(jnp.bfloat16)        # "backbone output" dtype
    out = jax.block_until_ready(net(feats))
    assert out.shape == (B, NUMCLASS)
    assert out.dtype == jnp.bfloat16

    # Matched-rounding reference (bf16 operands, f32 accumulation).
    ref = (jnp.dot(feats.astype(jnp.float32),
                   net.w_packed[:, :NUMCLASS].astype(jnp.float32))
           + net.fc_bias)
    assert jnp.allclose(out.astype(jnp.float32), ref, atol=2e-2, rtol=2e-2)

    # Sanity check against the full-f32 nn.Linear reference.
    ref_f32 = feats_f32 @ net.fc_weight.T + net.fc_bias
    assert jnp.allclose(out.astype(jnp.float32), ref_f32, atol=6e-2, rtol=6e-2)

    # --- path 2: f32 features, ragged multi-tile batch (no wrapper-side pad) --
    B2 = 52
    feats2 = jax.random.normal(k_in2, (B2, D), jnp.float32)
    out2 = jax.block_until_ready(
        fc_pallas(feats2, net.w_packed, net.b_packed, block_b=16))
    assert out2.shape == (B2, net.w_packed.shape[1])
    assert out2.dtype == jnp.float32
    ref2 = feats2 @ net.fc_weight.T + net.fc_bias
    assert jnp.allclose(out2[:, :NUMCLASS], ref2, atol=5e-2, rtol=5e-2)

    print("KERNEL_OK")
</pallas_src>

<mosaic_0001>
module attributes {stable_mosaic.version = 11 : i64} {
  func.func @fc_kernel(%arg0: i32, %arg1: memref<8x512xbf16, #tpu.memory_space<vmem>>, %arg2: memref<512x128xbf16, #tpu.memory_space<vmem>>, %arg3: memref<1x128xf32, #tpu.memory_space<vmem>>, %arg4: memref<8x128xbf16, #tpu.memory_space<vmem>>) attributes {dimension_semantics = [#tpu.dimension_semantics<parallel>], iteration_bounds = array<i64: 1>, scalar_prefetch = 0 : i64, scratch_operands = 0 : i64, tpu.core_type = #tpu.core_type<tc>, window_params = [{transform_indices = @transform_0, window_bounds = array<i64: 8, 512>}, {pipeline_mode = #tpu.pipeline_mode<synchronous>, transform_indices = @transform_1, window_bounds = array<i64: 512, 128>}, {pipeline_mode = #tpu.pipeline_mode<synchronous>, transform_indices = @transform_2, window_bounds = array<i64: 1, 128>}, {transform_indices = @transform_3, window_bounds = array<i64: 8, 128>}]} {
    %c0 = arith.constant 0 : index
    %c0_0 = arith.constant 0 : index
    %0 = vector.load %arg1[%c0, %c0_0] : memref<8x512xbf16, #tpu.memory_space<vmem>>, vector<8x512xbf16>
    %c0_1 = arith.constant 0 : index
    %c0_2 = arith.constant 0 : index
    %1 = vector.load %arg2[%c0_1, %c0_2] : memref<512x128xbf16, #tpu.memory_space<vmem>>, vector<512x128xbf16>
    %cst = arith.constant dense<0.000000e+00> : vector<8x128xf32>
    %2 = tpu.matmul %0, %1, %cst {dimension_numbers = #tpu.dot_dimension_numbers<[1], [0], [0], [1], [0, 0, 1, 1], [], []>} : vector<8x512xbf16>, vector<512x128xbf16>, vector<8x128xf32> -> vector<8x128xf32>
    %c0_3 = arith.constant 0 : index
    %c0_4 = arith.constant 0 : index
    %3 = vector.load %arg3[%c0_3, %c0_4] : memref<1x128xf32, #tpu.memory_space<vmem>>, vector<1x128xf32>
    %4 = vector.broadcast %3 : vector<1x128xf32> to vector<8x128xf32>
    %5 = arith.addf %2, %4 : vector<8x128xf32>
    %6 = arith.truncf %5 : vector<8x128xf32> to vector<8x128xbf16>
    %c0_5 = arith.constant 0 : index
    %c0_6 = arith.constant 0 : index
    %7 = vector.load %arg4[%c0_5, %c0_6] : memref<8x128xbf16, #tpu.memory_space<vmem>>, vector<8x128xbf16>
    tpu.vector_store %arg4[%c0_5, %c0_6], %6 {strides = array<i32>} : memref<8x128xbf16, #tpu.memory_space<vmem>>, vector<8x128xbf16>,
    return
  }
  func.func @transform_0(%arg0: i32) -> (i32, i32) {
    %c0_i32 = arith.constant 0 : i32
    %c0_i32_0 = arith.constant 0 : i32
    return %arg0, %c0_i32 : i32, i32
  }
  func.func @transform_1(%arg0: i32) -> (i32, i32) {
    %c0_i32 = arith.constant 0 : i32
    %c0_i32_0 = arith.constant 0 : i32
    %c0_i32_1 = arith.constant 0 : i32
    return %c0_i32, %c0_i32_0 : i32, i32
  }
  func.func @transform_2(%arg0: i32) -> (i32, i32) {
    %c0_i32 = arith.constant 0 : i32
    %c0_i32_0 = arith.constant 0 : i32
    %c0_i32_1 = arith.constant 0 : i32
    return %c0_i32, %c0_i32_0 : i32, i32
  }
  func.func @transform_3(%arg0: i32) -> (i32, i32) {
    %c0_i32 = arith.constant 0 : i32
    %c0_i32_0 = arith.constant 0 : i32
    return %arg0, %c0_i32 : i32, i32
  }
}

</mosaic_0001>

<bundles_post_ra>
// kernel: tpu_custom_call.1
= control target key start
LH: loop header
LB: loop body
LE: loop exit
PB: predicated region body
PF: predicated region fallthrough
CT: control target
= control target key end

     0   :  { %8 = vsyncpa [#allocation3], 0  ;;  %s644_s0 = inlined_call_operand.hbm [shape: bf16[8,512], index: 0, kind: input, shape index: {}]   ;;  %s645_s1 = inlined_call_operand.hbm [shape: bf16[512,128], index: 1, kind: input, shape index: {}]   ;;  %s646_s2 = inlined_call_operand.vmem [shape: f32[1,128], index: 2, kind: input, shape index: {}]   ;;  %s647_s3 = inlined_call_operand.hbm [shape: bf16[8,128], index: 3, kind: output, shape index: {}]  }
   0x1   :  { %9 = vsyncpa [#allocation6], 0 }
   0x2   :  { %10 = vsyncpa [#allocation4], 0  ;;  %s607_s12 = smov [#allocation2]   ;;  %s608_s14 = smov [#allocation5]  }
   0x3   :  { %s17_s13 = sshll.u32 %s607_s12, 4  ;;  %s26_s15 = sshll.u32 %s608_s14, 4  ;;  %s18_s13 = int_to_ptr.vmem [resolvable:$true] %s17_s13  ;;  %s27_s15 = int_to_ptr.vmem [resolvable:$true] %s26_s15 }
   0x4   :  { %s549_s16 = scalar_lea.vmem %s18_s13, 256  ;;  %p554_p1 = scmp.lt.s32.totalorder %s18_s13, %s18_s13 }
   0x5   :  { %p550_p0 = scmp.ne.s32.totalorder %s18_s13, %s549_s16  ;;  %p555_p2 = scmp.lt.s32.totalorder %s549_s16, %s549_s16 }
   0x7   :  { %p556_p3 = por %p555_p2, %p554_p1 }
   0x9   :  { %p557_p4 = pnand %p556_p3, %p550_p0 }
   0xb   :  { %560 = shalt.err (!%p557_p4)
}
   0xc   :  { %20 = dma.hbm_to_vmem [thread:$0]  %s644_s0, 256, %s18_s13, [#allocation3]  }
   0xd   :  { %s569_s19 = scalar_lea.vmem %s27_s15, 4096  ;;  %p574_p6 = scmp.lt.s32.totalorder %s27_s15, %s27_s15 }
   0xe   :  { %p570_p5 = scmp.ne.s32.totalorder %s27_s15, %s569_s19  ;;  %p575_p7 = scmp.lt.s32.totalorder %s569_s19, %s569_s19 }
  0x10   :  { %p576_p8 = por %p575_p7, %p574_p6 }
  0x12   :  { %p577_p9 = pnand %p576_p8, %p570_p5 }
  0x14   :  { %580 = shalt.err (!%p577_p9)
}
  0x15   :  { %s609_s20 = smov 64   ;;  %s610_s21 = smov 4  }
  0x16   :  { %32 = dma.hbm_to_vmem [thread:$0]  %s645_s1, 4096, %s27_s15, [#allocation6], %s609_s20, %s609_s20, %s610_s21  }
  0x17   :  { %601 = dma.done.wait [#allocation3], 256  }
  0x18   :  { %602 = vsyncadd [#allocation3], 4294967040 }
  0x19   :  { %603 = dma.done.wait [#allocation6], 4096  }
  0x1a   :  { %604 = vsyncadd [#allocation6], 4294963200  ;;  %v505_v0 = vld [vmem:[#allocation5 + $0x78] sm:$0xff]   ;;  %v509_v4 = vld [vmem:[#allocation5 + $0x70] sm:$0xff]   ;;  %s611_s24 = smov [#allocation7]  }
  0x1b   :  { %v506_v1 = vld [vmem:[#allocation5 + $0xf8] sm:$0xff]   ;;  %456 = vmatprep.subr.bf16.mxu0 %v505_v0  ;;  %v510_v5 = vld [vmem:[#allocation5 + $0xf0] sm:$0xff]   ;;  %v513_v8 = vld [vmem:[#allocation5 + $0x68] sm:$0xff]   ;;  %s409_s25 = sshll.u32 %s611_s24, 4  ;;  %s410_s25 = int_to_ptr.vmem [resolvable:$true] %s409_s25 }
  0x1c   :  { %v507_v2 = vld [vmem:[#allocation5 + $0x38] sm:$0xff]   ;;  %478 = vmatprep.subr.bf16.mxu1 %v506_v1  ;;  %v511_v6 = vld [vmem:[#allocation5 + $0x30] sm:$0xff]   ;;  %v514_v9 = vld [vmem:[#allocation5 + $0xe8] sm:$0xff]   ;;  %s581_s26 = scalar_lea.vmem %s410_s25, 64  ;;  %p586_p11 = scmp.lt.s32.totalorder %s410_s25, %s410_s25 }
  0x1d   :  { %v508_v3 = vld [vmem:[#allocation5 + $0xb8] sm:$0xff]   ;;  %457 = vmatpush3.bf16.msra.mxu0 %v507_v2  ;;  %v512_v7 = vld [vmem:[#allocation5 + $0xb0] sm:$0xff]   ;;  %v515_v10 = vld [vmem:[#allocation5 + $0x28] sm:$0xff]   ;;  %p582_p10 = scmp.ne.s32.totalorder %s410_s25, %s581_s26  ;;  %p587_p12 = scmp.lt.s32.totalorder %s581_s26, %s581_s26 }
  0x1e   :  { %479 = vmatpush3.bf16.msra.mxu1 %v508_v3  ;;  %458 = vmatprep.subr.bf16.mxu0 %v509_v4  ;;  %v516_v11 = vld [vmem:[#allocation5 + $0xa8] sm:$0xff]   ;;  %v517_v12 = vld [vmem:[#allocation5 + $0x60] sm:$0xff]   ;;  %v521_v16 = vld [vmem:[#allocation5 + $0x58] sm:$0xff]  }
  0x1f   :  { %480 = vmatprep.subr.bf16.mxu1 %v510_v5  ;;  %v518_v13 = vld [vmem:[#allocation5 + $0xe0] sm:$0xff]   ;;  %v522_v17 = vld [vmem:[#allocation5 + $0xd8] sm:$0xff]   ;;  %v525_v20 = vld [vmem:[#allocation5 + $0x50] sm:$0xff]   ;;  %p588_p13 = por %p587_p12, %p586_p11 }
  0x20   :  { %v519_v14 = vld [vmem:[#allocation5 + $0x20] sm:$0xff]   ;;  %v523_v18 = vld [vmem:[#allocation5 + $0x18] sm:$0xff]   ;;  %v526_v21 = vld [vmem:[#allocation5 + $0xd0] sm:$0xff]  }
  0x21   :  { %459 = vmatpush3.bf16.msra.mxu0 %v511_v6  ;;  %v520_v15 = vld [vmem:[#allocation5 + $0xa0] sm:$0xff]   ;;  %v524_v19 = vld [vmem:[#allocation5 + $0x98] sm:$0xff]   ;;  %v527_v22 = vld [vmem:[#allocation5 + $0x10] sm:$0xff]   ;;  %p589_p0 = pnand %p588_p13, %p582_p10 }
  0x22   :  { %481 = vmatpush3.bf16.msra.mxu1 %v512_v7  ;;  %460 = vmatprep.subr.bf16.mxu0 %v513_v8  ;;  %v528_v23 = vld [vmem:[#allocation5 + $0x90] sm:$0xff]   ;;  %v529_v24 = vld [vmem:[#allocation5 + $0x48] sm:$0xff]   ;;  %v533_v28 = vld [vmem:[#allocation5 + $0x40] sm:$0xff]  }
  0x23   :  { %482 = vmatprep.subr.bf16.mxu1 %v514_v9  ;;  %v530_v25 = vld [vmem:[#allocation5 + $0xc8] sm:$0xff]   ;;  %v534_v29 = vld [vmem:[#allocation5 + $0xc0] sm:$0xff]   ;;  %v42_v32 = vld [vmem:[#allocation2] sm:$0xff] }
  0x24   :  { %v531_v26 = vld [vmem:[#allocation5 + $0x8] sm:$0xff]   ;;  %v535_v30 = vld [vmem:[#allocation5] sm:$0xff]   ;;  %v43_v33 = vld [vmem:[#allocation2 + $0x8] sm:$0xff]  ;;  %v420_v34 = vcombine.low %v42_v32, %v42_v32  ;;  %v421_v35 = vcombine.high %v42_v32, %v42_v32 }
  0x25   :  { %461 = vmatpush3.bf16.msra.mxu0 %v515_v10  ;;  %v532_v27 = vld [vmem:[#allocation5 + $0x88] sm:$0xff]   ;;  %v536_v31 = vld [vmem:[#allocation5 + $0x80] sm:$0xff]   ;;  %v422_v36 = vcombine.low %v43_v33, %v43_v33  ;;  %v423_v37 = vcombine.high %v43_v33, %v43_v33  ;;  %v419_v40 = vld [vmem:[%s646_s2] ss:$0 sm:$0xff] }
  0x26   :  { %483 = vmatpush3.bf16.msra.mxu1 %v516_v11  ;;  %462 = vmatprep.subr.bf16.mxu0 %v517_v12 }
  0x27   :  { %484 = vmatprep.subr.bf16.mxu1 %v518_v13  ;;  %353 = vmatprep.mubr.bf16.mxu0 %v421_v35 }
  0x28   :  { %393 = vmatprep.mubr.bf16.mxu1 %v423_v37 }
  0x29   :  { %463 = vmatpush3.bf16.msra.mxu0 %v519_v14 }
  0x2a   :  { %485 = vmatpush3.bf16.msra.mxu1 %v520_v15  ;;  %464 = vmatprep.subr.bf16.mxu0 %v521_v16 }
  0x2b   :  { %486 = vmatprep.subr.bf16.mxu1 %v522_v17 }
  0x2d   :  { %465 = vmatpush3.bf16.msra.mxu0 %v523_v18 }
  0x2e   :  { %487 = vmatpush3.bf16.msra.mxu1 %v524_v19  ;;  %466 = vmatprep.subr.bf16.mxu0 %v525_v20 }
  0x2f   :  { %488 = vmatprep.subr.bf16.mxu1 %v526_v21 }
  0x31   :  { %467 = vmatpush3.bf16.msra.mxu0 %v527_v22 }
  0x32   :  { %489 = vmatpush3.bf16.msra.mxu1 %v528_v23  ;;  %468 = vmatprep.subr.bf16.mxu0 %v529_v24 }
  0x33   :  { %490 = vmatprep.subr.bf16.mxu1 %v530_v25 }
  0x35   :  { %469 = vmatpush3.bf16.msra.mxu0 %v531_v26 }
  0x36   :  { %491 = vmatpush3.bf16.msra.mxu1 %v532_v27  ;;  %470 = vmatprep.subr.bf16.mxu0 %v533_v28 }
  0x37   :  { %492 = vmatprep.subr.bf16.mxu1 %v534_v29 }
  0x39   :  { %471 = vmatpush3.bf16.msra.mxu0 %v535_v30 }
  0x3a   :  { %493 = vmatpush3.bf16.msra.mxu1 %v536_v31 }
  0x3c   :  { %354 = vmatmul.mubr.bf16.vlgmr.msra.gmra.mxu0 %v420_v34 }
  0x3d   :  { %394 = vmatmul.mubr.bf16.vlgmr.msra.gmra.mxu1 %v422_v36 }
  0xfc   :  { %v472_v38 = vpop.f32.mrf.mxu0 }
  0xfd   :  { %v494_v39 = vpop.f32.mrf.mxu1 }
  0xfe   :  { %v473_v41 = vpop.f32.mrf.mxu0 }
  0xff   :  { %v495_v42 = vpop.f32.mrf.mxu1  ;;  %v474_v43 = vadd.f32 %v473_v41, %v472_v38 }
 0x100   :  { %v475_v44 = vpop.f32.mrf.mxu0  ;;  %v496_v47 = vadd.f32 %v495_v42, %v494_v39 }
 0x101   :  { %v497_v45 = vpop.f32.mrf.mxu1  ;;  %v356_v46 = vadd.f32 %v474_v43, %v419_v40 }
 0x102   :  { %v476_v48 = vpop.f32.mrf.mxu0 }
 0x103   :  { %v498_v49 = vpop.f32.mrf.mxu1  ;;  %v396_v50 = vadd.f32 %v496_v47, %v356_v46 }
 0x105   :  { %v401_v51 = vpack.c.bf16 %v396_v50, %v396_v50 }
 0x107   :  { %402 = vst [vmem:[#allocation7] sm:$0xf] %v401_v51 }
 0x108   :  { %592 = shalt.err (!%p589_p0)
}
 0x109   :  { %412 = dma.vmem_to_hbm [thread:$0]  %s410_s25, 64, %s647_s3, [#allocation4]  }
 0x10a   :  { %605 = dma.done.wait [#allocation4], 64  }
 0x10b   :  { %606 = vsyncadd [#allocation4], 4294967232 }
 0x10c   :  { %416 = vsyncpa [#allocation3], 1 }
 0x10d   :  { %417 = vsyncpa [#allocation6], 1 }
 0x10e   :  { %418 = vsyncpa [#allocation4], 1 }

</bundles_post_ra>
